<compile_context>
chip_gen: v7x
topology: tpu7x:2x2x1
jax: 0.10.0
libtpu: 0.0.40
codegen_flags: <defaults>
</compile_context>

<pallas_src>
import jax
import jax.numpy as jnp
from jax.experimental import pallas as pl
from jax.experimental.pallas import tpu as pltpu


def _round_up(n, m):
    return (n + m - 1) // m * m


def _discriminator_kernel(x_ref, w1_ref, b1_ref, w2_ref, b2_ref,
                          w3_ref, b3_ref, o_ref):
    # Layer 1: Linear(784 -> 256) + LeakyReLU(0.2). bf16 MXU inputs, f32 acc.
    # (astype is a no-op when x is already streamed as bf16.)
    x = x_ref[...].astype(jnp.bfloat16)
    h = jnp.dot(x, w1_ref[...], preferred_element_type=jnp.float32) + b1_ref[...]
    h = jnp.maximum(h, 0.2 * h)

    # Layer 2: Linear(256 -> 256) + LeakyReLU(0.2).
    h = jnp.dot(h.astype(jnp.bfloat16), w2_ref[...],
                preferred_element_type=jnp.float32) + b2_ref[...]
    h = jnp.maximum(h, 0.2 * h)

    # Layer 3: Linear(256 -> 1) + Sigmoid. An N=1 matmul would use 1 of
    # 128/256 MXU output lanes, so do it on the VPU/XLU instead:
    # elementwise multiply by the (1,256) weight row, reduce over lanes.
    logits = jnp.sum(h * w3_ref[...], axis=-1, keepdims=True) + b3_ref[0, 0]
    o_ref[...] = jax.nn.sigmoid(logits)


def discriminator_forward(x, params, *, block_b=2048):
    """x: (B, 784) f32 or bf16.  Returns (B, 1) f32 sigmoid scores."""
    w1, b1, w2, b2, w3, b3 = params
    B, K = x.shape
    assert K == 784

    # Batch tile:
    #  * sublane-aligned (8 for f32 x, 16 for bf16 x),
    #  * capped at block_b (<=2048 keeps double-buffered tiles under the
    #    32 MiB scoped VMEM limit on v7x; v5e/v6e have plenty of headroom),
    #  * capped at ~ceil(B/2) so the grid has >=2 steps (v7x megacore).
    align = 16 if x.dtype == jnp.bfloat16 else 8
    half = _round_up(pl.cdiv(B, 2), align)
    tb = max(align, min(block_b, half))
    grid = (pl.cdiv(B, tb),)   # ragged last block handled by Pallas (no jnp.pad)

    # Weights in bf16 for the MXU (tiny arrays; stay VMEM-resident).
    w1b = w1.astype(jnp.bfloat16)
    w2b = w2.astype(jnp.bfloat16)
    b1r = b1.reshape(1, 256).astype(jnp.float32)
    b2r = b2.reshape(1, 256).astype(jnp.float32)
    w3r = w3.reshape(1, 256).astype(jnp.float32)   # (256,1) -> (1,256) row
    b3r = b3.reshape(1, 1).astype(jnp.float32)     # scalar -> SMEM

    flops = 2 * B * (784 * 256 + 256 * 256 + 256)
    bytes_accessed = (x.size * x.dtype.itemsize
                      + w1b.size * 2 + w2b.size * 2
                      + b1r.size * 4 + b2r.size * 4 + w3r.size * 4 + 4
                      + B * 4)

    out = pl.pallas_call(
        _discriminator_kernel,
        out_shape=jax.ShapeDtypeStruct((B, 1), jnp.float32),
        grid=grid,
        in_specs=[
            pl.BlockSpec((tb, 784), lambda i: (i, 0)),         # x tile (streamed)
            pl.BlockSpec((784, 256), lambda i: (0, 0)),         # w1 (resident)
            pl.BlockSpec((1, 256), lambda i: (0, 0)),           # b1
            pl.BlockSpec((256, 256), lambda i: (0, 0)),          # w2
            pl.BlockSpec((1, 256), lambda i: (0, 0)),           # b2
            pl.BlockSpec((1, 256), lambda i: (0, 0)),           # w3 row
            pl.BlockSpec(memory_space=pltpu.MemorySpace.SMEM),   # b3 scalar
        ],
        out_specs=pl.BlockSpec((tb, 1), lambda i: (i, 0)),
        compiler_params=pltpu.CompilerParams(
            dimension_semantics=("parallel",),
            vmem_limit_bytes=32 << 20,
        ),
        cost_estimate=pl.CostEstimate(
            flops=flops,
            transcendentals=B,
            bytes_accessed=bytes_accessed,
        ),
    )(x, w1b, b1r, w2b, b2r, w3r, b3r)

    return out


def init_params(key):
    """Deterministic synthetic parameters matching the PyTorch module shapes.

    PyTorch stores Linear weights as (out, in); here we keep them as (in, out)
    so the kernel does x @ W directly.
    """
    k1, k2, k3 = jax.random.split(key, 3)
    scale = 0.02
    w1 = scale * jax.random.normal(k1, (784, 256), jnp.float32)
    b1 = jnp.zeros((1, 256), jnp.float32)
    w2 = scale * jax.random.normal(k2, (256, 256), jnp.float32)
    b2 = jnp.zeros((1, 256), jnp.float32)
    w3 = scale * jax.random.normal(k3, (256, 1), jnp.float32)
    b3 = jnp.zeros((1, 1), jnp.float32)
    return (w1, b1, w2, b2, w3, b3)


def _reference_forward(x, params):
    # Pure-JAX f32 reference for correctness checking.
    w1, b1, w2, b2, w3, b3 = params
    x = x.astype(jnp.float32)
    h = x @ w1 + b1
    h = jnp.where(h > 0, h, 0.2 * h)
    h = h @ w2 + b2
    h = jnp.where(h > 0, h, 0.2 * h)
    h = h @ w3 + b3
    return jax.nn.sigmoid(h)


if __name__ == "__main__":
    key = jax.random.PRNGKey(0)
    kx, kp = jax.random.split(key)
    params = init_params(kp)

    # Case 1: ragged batch.  B=20 with block_b=2048 gives tb=16, grid=2 and a
    # ragged last block (exercises the no-pad / masked-writeback path).
    B = 20
    x = jax.random.normal(kx, (B, 784), jnp.float32)   # flattened 28x28 images
    out = discriminator_forward(x, params)
    out = jax.block_until_ready(out)
    ref = _reference_forward(x, params)
    assert out.shape == (B, 1)
    # bf16 MXU inputs with f32 accumulation vs pure-f32 reference: loose tol.
    assert jnp.allclose(out, ref, atol=2e-2, rtol=2e-2), (
        float(jnp.max(jnp.abs(out - ref))))

    # Case 2: evenly divisible batch with a small tile (multi-step grid) and a
    # bf16 input stream (the halved-HBM path; astype in kernel is a no-op).
    B2 = 48
    x2 = jax.random.normal(kx, (B2, 784), jnp.float32).astype(jnp.bfloat16)
    out2 = discriminator_forward(x2, params, block_b=16)
    out2 = jax.block_until_ready(out2)
    ref2 = _reference_forward(x2, params)
    assert out2.shape == (B2, 1)
    assert jnp.allclose(out2, ref2, atol=2e-2, rtol=2e-2), (
        float(jnp.max(jnp.abs(out2 - ref2))))

    print("KERNEL_OK")
</pallas_src>

<mosaic_0001>
module attributes {stable_mosaic.version = 11 : i64} {
  func.func @_discriminator_kernel(%arg0: i32, %arg1: memref<16x784xf32, #tpu.memory_space<vmem>>, %arg2: memref<784x256xbf16, #tpu.memory_space<vmem>>, %arg3: memref<1x256xf32, #tpu.memory_space<vmem>>, %arg4: memref<256x256xbf16, #tpu.memory_space<vmem>>, %arg5: memref<1x256xf32, #tpu.memory_space<vmem>>, %arg6: memref<1x256xf32, #tpu.memory_space<vmem>>, %arg7: memref<1x1xf32, #tpu.memory_space<smem>>, %arg8: memref<16x1xf32, #tpu.memory_space<vmem>>) attributes {dimension_semantics = [#tpu.dimension_semantics<parallel>], iteration_bounds = array<i64: 2>, scalar_prefetch = 0 : i64, scratch_operands = 0 : i64, tpu.core_type = #tpu.core_type<tc>, window_params = [{transform_indices = @transform_0, window_bounds = array<i64: 16, 784>}, {pipeline_mode = #tpu.pipeline_mode<synchronous>, transform_indices = @transform_1, window_bounds = array<i64: 784, 256>}, {pipeline_mode = #tpu.pipeline_mode<synchronous>, transform_indices = @transform_2, window_bounds = array<i64: 1, 256>}, {pipeline_mode = #tpu.pipeline_mode<synchronous>, transform_indices = @transform_3, window_bounds = array<i64: 256, 256>}, {pipeline_mode = #tpu.pipeline_mode<synchronous>, transform_indices = @transform_4, window_bounds = array<i64: 1, 256>}, {pipeline_mode = #tpu.pipeline_mode<synchronous>, transform_indices = @transform_5, window_bounds = array<i64: 1, 256>}, {transform_indices = @transform_6, window_bounds = array<i64: 1, 1>}, {transform_indices = @transform_7, window_bounds = array<i64: 16, 1>}]} {
    %c0 = arith.constant 0 : index
    %c0_0 = arith.constant 0 : index
    %0 = vector.load %arg1[%c0, %c0_0] : memref<16x784xf32, #tpu.memory_space<vmem>>, vector<16x784xf32>
    %1 = arith.truncf %0 : vector<16x784xf32> to vector<16x784xbf16>
    %c0_1 = arith.constant 0 : index
    %c0_2 = arith.constant 0 : index
    %2 = vector.load %arg2[%c0_1, %c0_2] : memref<784x256xbf16, #tpu.memory_space<vmem>>, vector<784x256xbf16>
    %cst = arith.constant dense<0.000000e+00> : vector<16x256xf32>
    %3 = tpu.matmul %1, %2, %cst {dimension_numbers = #tpu.dot_dimension_numbers<[1], [0], [0], [1], [0, 0, 1, 1], [], []>} : vector<16x784xbf16>, vector<784x256xbf16>, vector<16x256xf32> -> vector<16x256xf32>
    %c0_3 = arith.constant 0 : index
    %c0_4 = arith.constant 0 : index
    %4 = vector.load %arg3[%c0_3, %c0_4] : memref<1x256xf32, #tpu.memory_space<vmem>>, vector<1x256xf32>
    %5 = vector.broadcast %4 : vector<1x256xf32> to vector<16x256xf32>
    %6 = arith.addf %3, %5 : vector<16x256xf32>
    %cst_5 = arith.constant 2.000000e-01 : f32
    %7 = vector.broadcast %cst_5 : f32 to vector<16x256xf32>
    %8 = arith.mulf %7, %6 : vector<16x256xf32>
    %9 = arith.maximumf %6, %8 : vector<16x256xf32>
    %10 = arith.truncf %9 : vector<16x256xf32> to vector<16x256xbf16>
    %c0_6 = arith.constant 0 : index
    %c0_7 = arith.constant 0 : index
    %11 = vector.load %arg4[%c0_6, %c0_7] : memref<256x256xbf16, #tpu.memory_space<vmem>>, vector<256x256xbf16>
    %cst_8 = arith.constant dense<0.000000e+00> : vector<16x256xf32>
    %12 = tpu.matmul %10, %11, %cst_8 {dimension_numbers = #tpu.dot_dimension_numbers<[1], [0], [0], [1], [0, 0, 1, 1], [], []>} : vector<16x256xbf16>, vector<256x256xbf16>, vector<16x256xf32> -> vector<16x256xf32>
    %c0_9 = arith.constant 0 : index
    %c0_10 = arith.constant 0 : index
    %13 = vector.load %arg5[%c0_9, %c0_10] : memref<1x256xf32, #tpu.memory_space<vmem>>, vector<1x256xf32>
    %14 = vector.broadcast %13 : vector<1x256xf32> to vector<16x256xf32>
    %15 = arith.addf %12, %14 : vector<16x256xf32>
    %cst_11 = arith.constant 2.000000e-01 : f32
    %16 = vector.broadcast %cst_11 : f32 to vector<16x256xf32>
    %17 = arith.mulf %16, %15 : vector<16x256xf32>
    %18 = arith.maximumf %15, %17 : vector<16x256xf32>
    %c0_12 = arith.constant 0 : index
    %c0_13 = arith.constant 0 : index
    %19 = vector.load %arg6[%c0_12, %c0_13] : memref<1x256xf32, #tpu.memory_space<vmem>>, vector<1x256xf32>
    %20 = vector.broadcast %19 : vector<1x256xf32> to vector<16x256xf32>
    %21 = arith.mulf %18, %20 : vector<16x256xf32>
    %cst_14 = arith.constant dense<0.000000e+00> : vector<16xf32>
    %22 = vector.multi_reduction <add>, %21, %cst_14 [1] : vector<16x256xf32> to vector<16xf32>
    %23 = vector.shape_cast %22 : vector<16xf32> to vector<16x1xf32>
    %c0_15 = arith.constant 0 : index
    %c0_16 = arith.constant 0 : index
    %24 = memref.load %arg7[%c0_15, %c0_16] : memref<1x1xf32, #tpu.memory_space<smem>>
    %25 = vector.broadcast %24 : f32 to vector<16x1xf32>
    %26 = arith.addf %23, %25 : vector<16x1xf32>
    %27 = arith.negf %26 : vector<16x1xf32>
    %28 = math.exp %27 : vector<16x1xf32>
    %cst_17 = arith.constant 1.000000e+00 : f32
    %29 = vector.broadcast %cst_17 : f32 to vector<16x1xf32>
    %30 = arith.addf %29, %28 : vector<16x1xf32>
    %31 = arith.divf %29, %30 : vector<16x1xf32>
    %c0_18 = arith.constant 0 : index
    %c0_19 = arith.constant 0 : index
    %32 = vector.load %arg8[%c0_18, %c0_19] : memref<16x1xf32, #tpu.memory_space<vmem>>, vector<16x1xf32>
    tpu.vector_store %arg8[%c0_18, %c0_19], %31 {strides = array<i32>} : memref<16x1xf32, #tpu.memory_space<vmem>>, vector<16x1xf32>,
    return
  }
  func.func @transform_0(%arg0: i32) -> (i32, i32) {
    %c0_i32 = arith.constant 0 : i32
    %c0_i32_0 = arith.constant 0 : i32
    return %arg0, %c0_i32 : i32, i32
  }
  func.func @transform_1(%arg0: i32) -> (i32, i32) {
    %c0_i32 = arith.constant 0 : i32
    %c0_i32_0 = arith.constant 0 : i32
    %c0_i32_1 = arith.constant 0 : i32
    return %c0_i32, %c0_i32_0 : i32, i32
  }
  func.func @transform_2(%arg0: i32) -> (i32, i32) {
    %c0_i32 = arith.constant 0 : i32
    %c0_i32_0 = arith.constant 0 : i32
    %c0_i32_1 = arith.constant 0 : i32
    return %c0_i32, %c0_i32_0 : i32, i32
  }
  func.func @transform_3(%arg0: i32) -> (i32, i32) {
    %c0_i32 = arith.constant 0 : i32
    %c0_i32_0 = arith.constant 0 : i32
    %c0_i32_1 = arith.constant 0 : i32
    return %c0_i32, %c0_i32_0 : i32, i32
  }
  func.func @transform_4(%arg0: i32) -> (i32, i32) {
    %c0_i32 = arith.constant 0 : i32
    %c0_i32_0 = arith.constant 0 : i32
    %c0_i32_1 = arith.constant 0 : i32
    return %c0_i32, %c0_i32_0 : i32, i32
  }
  func.func @transform_5(%arg0: i32) -> (i32, i32) {
    %c0_i32 = arith.constant 0 : i32
    %c0_i32_0 = arith.constant 0 : i32
    %c0_i32_1 = arith.constant 0 : i32
    return %c0_i32, %c0_i32_0 : i32, i32
  }
  func.func @transform_6(%arg0: i32) -> (i32, i32) {
    %c0_i32 = arith.constant 0 : i32
    %c0_i32_0 = arith.constant 0 : i32
    %c0_i32_1 = arith.constant 0 : i32
    return %c0_i32, %c0_i32_0 : i32, i32
  }
  func.func @transform_7(%arg0: i32) -> (i32, i32) {
    %c0_i32 = arith.constant 0 : i32
    %c0_i32_0 = arith.constant 0 : i32
    return %arg0, %c0_i32 : i32, i32
  }
}

</mosaic_0001>

<bundles_post_ra>
// kernel: tpu_custom_call.1
= control target key start
LH: loop header
LB: loop body
LE: loop exit
PB: predicated region body
PF: predicated region fallthrough
CT: control target
= control target key end

     0   :  { %s2695_s0 = inlined_call_operand.hbm [shape: f32[20,784], index: 0, kind: input, shape index: {}]   ;;  %s2696_s1 = inlined_call_operand.hbm [shape: bf16[784,256], index: 1, kind: input, shape index: {}]   ;;  %s2697_s2 = inlined_call_operand.vmem [shape: f32[1,256], index: 2, kind: input, shape index: {}]   ;;  %s2698_s3 = inlined_call_operand.hbm [shape: bf16[256,256], index: 3, kind: input, shape index: {}]   ;;  %s2699_s4 = inlined_call_operand.vmem [shape: f32[1,256], index: 4, kind: input, shape index: {}]   ;;  %s2700_s5 = inlined_call_operand.vmem [shape: f32[1,256], index: 5, kind: input, shape index: {}]   ;;  %s2701_s6 = inlined_call_operand.<no memory space> [shape: f32[1,1], index: 6, kind: input, shape index: {}]   ;;  %s2702_s7 = inlined_call_operand.vmem [shape: f32[20,1], index: 7, kind: output, shape index: {}]  }
   0x1   :  { %12 = sst [smem:[#allocation2]] %s2701_s6 }
   0x2   :  { %13 = vsyncpa [#allocation4], 0 }
   0x3   :  { %15 = vsyncpa [#allocation4 + $0x1], 0 }
   0x4   :  { %16 = vsyncpa [#allocation6], 0  ;;  %s2448_s26 = smov 0   ;;  %s2450_s27 = smov 0  }
   0x5   :  { %s2452_s28 = smov 0   ;;  %s2454_s29 = smov 0  }
   0x6 LB: > { %s2467_s6 = sadd.s32 4294967295, %s2363_s29   ;;  %s2470_s30 = sadd.s32 1, %s2363_s29   ;;  %s2363_s29 = sphi %s2454_s29, %s2720_s29   ;;  %s2359_s28 = sphi %s2452_s28, %s2719_s28   ;;  %s2355_s27 = sphi %s2450_s27, %s2718_s27   ;;  %s2351_s26 = sphi %s2448_s26, %s2717_s26  }
   0x7   : > { %s26_s8 = ssub.s32 %s2363_s29, %s2470_s30  ;;  %s29_s9 = sadd.s32 1, %s2359_s28 }
   0x8   : > { %p27_p0 = scmp.eq.s32.totalorder %s26_s8, 0  ;;  %p36_p1 = scmp.ne.s32.totalorder %s2359_s28, %s2355_s27 }
   0x9   : > { %p37_p2 = scmp.eq.s32.totalorder %s2363_s29, 0  ;;  %p42_p3 = scmp.ne.s32.totalorder %s2355_s27, %s2351_s26 }
   0xa   : > { %s2480_s10 = scalar_select %p27_p0, %s2359_s28, %s29_s9  }
   0xb   : > { %p2482_p4 = por %p37_p2, %p36_p1  ;;  %p2703_p5 = scmp.eq.s32.totalorder %s2467_s6, 0 }
   0xc   : > { %p192_p6 = scmp.eq.s32.totalorder %s2467_s6, 1  ;;  %p1696_p7 = scmp.ge.s32.totalorder %s2363_s29, 1 }
   0xd   : > { %s2706_s11 = scalar_select %p2482_p4, 1, 0 }
   0xe   : > { %p2491_p8 = por %p2703_p5, %p42_p3  ;;  %p205_p9 = scmp.lt.s32.totalorder %s2363_s29, 3 }
   0xf   : > { %p2496_p10 = por %p192_p6, %p36_p1  ;;  %s2397_s15 = smov [#allocation5]  }
  0x10   : > { %s2707_s12 = scalar_select %p2491_p8, 1, 0 }
  0x11   : > { %s2708_s13 = scalar_select %p2496_p10, 1, 0 }
  0x12   : > { %p2500_p11 = pnand %p1696_p7, %p205_p9  ;;  %s217_s16 = sshll.u32 %s2397_s15, 4  ;;  %s218_s16 = int_to_ptr.vmem [resolvable:$true] %s217_s16 }
  0x13   : > { %s2398_s18 = smov [#allocation7]   ;;  %s2209_s22 = scalar_lea.hbm %s2696_s1, 12544 }
  0x14   : > { %s2709_s14 = scalar_select %p2500_p11, 1, 0 }
  0x15   : > { %p1892_p12 = pneg %p2500_p11  ;;  %s233_s19 = sshll.u32 %s2398_s18, 4  ;;  %s2512_s19 = int_to_ptr.vmem [resolvable:$true] %s233_s19 }
  0x16   : > { %p2210_p0 = scmp.ne.s32.totalorder %s2696_s1, %s2209_s22  ;;  %p2216_p6 = scmp.lt.u32.totalorder %s2209_s22, %s2696_s1 }
  0x17   : > { %p2508_p13 = pnand %p1892_p12, %p2703_p5 }
  0x19   : > { %p2211_p1 = pneg %p2508_p13 }
  0x1b   : > { %p2212_p2 = pnand %p2211_p1, %p2210_p0 }
  0x1d   : > { %p2213_p3 = pneg %p2212_p2 }
  0x1f   : > { %p2218_p7 = pnand %p2216_p6, %p2213_p3 }
  0x21   : > { %2221 = shalt.err (!%p2218_p7)
}
  0x22   : > { %s2222_s8 = scalar_lea.vmem %s218_s16, 12544  ;;  %p2230_p10 = scmp.lt.s32.totalorder %s218_s16, %s218_s16 }
  0x23   : > { %p2223_p9 = scmp.ne.s32.totalorder %s218_s16, %s2222_s8  ;;  %p2231_p8 = scmp.lt.s32.totalorder %s2222_s8, %s2222_s8 }
  0x25   : > { %p2225_p12 = pnand %p2223_p9, %p2211_p1  ;;  %p2232_p11 = por %p2231_p8, %p2230_p10 }
  0x27   : > { %p2226_p5 = pneg %p2225_p12 }
  0x29   : > { %p2233_p4 = pnand %p2232_p11, %p2226_p5 }
  0x2b   : > { %2236 = shalt.err (!%p2233_p4)
}
  0x2c   : > { %s2399_s9 = smov 128   ;;  %s2400_s15 = smov 8  }
  0x2d   : > { %1895 = dma.hbm_to_vmem [thread:$0]  (!%p2508_p13), %s2696_s1, 12544, %s218_s16, [#allocation6], %s2399_s9, %s2399_s9, %s2400_s15  }
  0x2e   : > { %s2237_s23 = scalar_lea.hbm %s2698_s3, 4096 }
  0x2f   : > { %p2238_p0 = scmp.ne.s32.totalorder %s2698_s3, %s2237_s23  ;;  %p2244_p8 = scmp.lt.u32.totalorder %s2237_s23, %s2698_s3 }
  0x31   : > { %p2240_p4 = pnand %p2238_p0, %p2211_p1 }
  0x33   : > { %p2241_p5 = pneg %p2240_p4 }
  0x35   : > { %p2246_p10 = pnand %p2244_p8, %p2241_p5 }
  0x37   : > { %2249 = shalt.err (!%p2246_p10)
}
  0x38   : > { %s2250_s16 = scalar_lea.vmem %s2512_s19, 4096  ;;  %p2258_p6 = scmp.lt.s32.totalorder %s2512_s19, %s2512_s19 }
  0x39   : > { %p2251_p11 = scmp.ne.s32.totalorder %s2512_s19, %s2250_s16  ;;  %p2259_p7 = scmp.lt.s32.totalorder %s2250_s16, %s2250_s16 }
  0x3b   : > { %p2253_p2 = pnand %p2251_p11, %p2211_p1  ;;  %p2260_p9 = por %p2259_p7, %p2258_p6 }
  0x3d   : > { %p2254_p3 = pneg %p2253_p2 }
  0x3f   : > { %p2261_p12 = pnand %p2260_p9, %p2254_p3 }
  0x41   : > { %2264 = shalt.err (!%p2261_p12)
}
  0x42   : > { %1898 = dma.hbm_to_vmem [thread:$0]  (!%p2508_p13), %s2698_s3, 4096, %s2512_s19, [#allocation6], %s2399_s9, %s2399_s9, %s2400_s15  }
  0x43   : > { %p1699_p0 = scmp.ge.s32.totalorder %s2363_s29, 2 }
  0x44   : > { %p2711_p4 = scmp.ne.s32.totalorder (!%p1699_p0), %s2706_s11, 0 }
  0x45   : > { %252 = sbr.rel (%p1699_p0) target bundleno = 112 (0x70), region = 40 }
  0x4c   : > { %255 = sbr.rel (!%p2711_p4) target bundleno = 112 (0x70), region = 44  ;;  %s256_s21 = sand.u32 (%p2711_p4), 1, %s2359_s28  }
  0x4d   : > { %s1700_s22 = sshll.u32 (%p2711_p4), %s2363_s29, 1  ;;  %s1880_s23 = smul.u32 (%p2711_p4), 112, %s256_s21 }
  0x4e   : > { %s262_s24 = ssub.s32 (%p2711_p4), 3, %s1700_s22  ;;  %s2569_s26 = scalar_lea.sflag (%p2711_p4), [#allocation4], %s256_s21 }
  0x4f   : > { %p263_p1 = scmp.lt.s32.totalorder (%p2711_p4), %s262_s24, 2  ;;  %s260_s19 = scalar_lea.vmem (%p2711_p4), [#allocation3], %s1880_s23 }
  0x53   : > { %s2722_s24 = smov (!%p263_p1, %s262_s24), 2 }
  0x54   : > { %s2566_s17 = smul.u32 896, %s2722_s24 }
  0x56   : > { %s268_s25 = ssub.s32 1792, %s2566_s17 }
  0x57   : > { %269 = vsyncadd %s2569_s26, %s268_s25  ;;  %p1703_p13 = scmp.ne.s32.totalorder %s2566_s17, 0  ;;  %s1881_s11 = smul.u32 1792, %s2363_s29 }
  0x58   : > { %s275_s9 = sshll.u32 %s260_s19, 4  ;;  %s2269_s29 = scalar_lea.hbm %s2695_s0, 2688  ;;  %s2579_s9 = int_to_ptr.vmem [resolvable:$true] %s275_s9 }
  0x59   : > { %s2577_s16 = scalar_lea.hbm %s2695_s0, %s1881_s11 }
  0x5a   : > { %s2265_s18 = scalar_lea.hbm %s2577_s16, %s2566_s17  ;;  %p2270_p11 = scmp.lt.u32.totalorder %s2577_s16, %s2695_s0 }
  0x5b   : > { %p2266_p5 = scmp.ne.s32.totalorder %s2577_s16, %s2265_s18  ;;  %p2271_p2 = scmp.lt.u32.totalorder %s2269_s29, %s2265_s18 }
  0x5c   : > { %p2273_p6 = scmp.lt.u32.totalorder %s2265_s18, %s2577_s16 }
  0x5d   : > { %p2267_p8 = pnand %p2266_p5, %p1703_p13  ;;  %p2272_p3 = por %p2271_p2, %p2270_p11 }
  0x5f   : > { %p2268_p10 = pneg %p2267_p8  ;;  %p2274_p7 = por %p2273_p6, %p2272_p3 }
  0x61   : > { %p2275_p9 = pnand %p2274_p7, %p2268_p10 }
  0x63   : > { %2278 = shalt.err (!%p2275_p9)
}
  0x64   : > { %s2279_s24 = scalar_lea.vmem %s2579_s9, %s2566_s17  ;;  %s2401_s25 = smov [#allocation3]  }
  0x65   : > { %p2280_p12 = scmp.ne.s32.totalorder %s2579_s9, %s2279_s24  ;;  %s2283_s19 = sshll.u32 %s2401_s25, 4  ;;  %s2284_s19 = int_to_ptr.vmem [resolvable:$false] %s2283_s19 }
  0x66   : > { %s2285_s11 = scalar_lea.vmem %s2284_s19, 3584  ;;  %p2286_p1 = scmp.lt.s32.totalorder %s2579_s9, %s2284_s19 }
  0x67   : > { %p2281_p0 = pnand %p2280_p12, %p1703_p13  ;;  %p2287_p5 = scmp.lt.s32.totalorder %s2285_s11, %s2279_s24 }
  0x69   : > { %p2282_p4 = pneg %p2281_p0  ;;  %p2288_p8 = por %p2287_p5, %p2286_p1 }
  0x6b   : > { %p2289_p11 = pnand %p2288_p8, %p2282_p4 }
  0x6d   : > { %2292 = shalt.err (!%p2289_p11)
}
  0x6e   : > { %s2402_s15 = smov 896   ;;  %s2403_s8 = smov 56  }
  0x6f   : > { %281 = dma.hbm_to_vmem [thread:$0]  (%p1703_p13), %s2577_s16, %s2566_s17, %s2579_s9, %s2569_s26, %s2402_s15, %s2402_s15, %s2403_s8  }
  0x70 PF: > { %p2712_p10 = scmp.ne.s32.totalorder %s2709_s14, 0 }
  0x71   : > { %s2609_s18 = sand.u32 (!%p2712_p10), 1, %s2355_s27   ;;  %p2713_p2 = scmp.ne.s32.totalorder (!%p2712_p10), %s2707_s12, 0 }
  0x72   : > { %287 = sbr.rel (%p2712_p10) target bundleno = 937 (0x3a9), region = 48  ;;  %s290_s21 = scalar_lea.sflag (!%p2712_p10), [#allocation4], %s2609_s18 }
  0x73   : > { %s1882_s20 = smul.u32 (!%p2712_p10), 112, %s2609_s18 }
  0x75   : > { %s2613_s29 = scalar_lea.vmem (!%p2712_p10), [#allocation3], %s1882_s20 }
  0x79   : > { %2342 = dma.done.wait (%p2713_p2), %s290_s21, 1792  }
  0x7a   : > { %2344 = vsyncadd (%p2713_p2), %s290_s21, 4294965504  ;;  %p2714_p13 = scmp.eq.s32.totalorder %s2467_s6, 0 }
  0x7c   : > { %2346 = dma.done.wait (%p2714_p13), [#allocation6], 16640   ;;  %p2715_p3 = pmov %p2714_p13 }
  0x7d   : > { %v2006_v0 = vld [vmem:[#allocation5 + $0x104] ss:$8 sps:$4 sm:$0xff]   ;;  %v2008_v1 = vld [vmem:[#allocation5 + $0x100] ss:$8 sps:$4 sm:$0xff]   ;;  %v2009_v2 = vld [vmem:[#allocation5 + $0x114] ss:$8 sps:$4 sm:$0xff]  }
  0x7e   : > { %2348 = vsyncadd (%p2715_p3), [#allocation6], 4294950656  ;;  %1011 = vmatprep.subr.bf16.mxu0 %v2006_v0  ;;  %v2011_v3 = vld [vmem:[#allocation5 + $0x110] ss:$8 sps:$4 sm:$0xff]   ;;  %v2012_v4 = vld [vmem:[#allocation5 + $0x124] ss:$8 sps:$4 sm:$0xff]  }
  0x7f   : > { %1012 = vmatpush1.bf16.msra.mxu0 %v2008_v1  ;;  %v2014_v5 = vld [vmem:[#allocation5 + $0x120] ss:$8 sps:$4 sm:$0xff]   ;;  %v2015_v6 = vld [vmem:[#allocation5 + $0x134] ss:$8 sps:$4 sm:$0xff]   ;;  %v2017_v7 = vld [vmem:[#allocation5 + $0x130] ss:$8 sps:$4 sm:$0xff]  }
  0x80   : > { %1013 = vmatprep.subr.bf16.mxu0 %v2009_v2  ;;  %v2018_v8 = vld [vmem:[#allocation5 + $0x144] ss:$8 sps:$4 sm:$0xff]   ;;  %v2020_v9 = vld [vmem:[#allocation5 + $0x140] ss:$8 sps:$4 sm:$0xff]   ;;  %v2021_v10 = vld [vmem:[#allocation5 + $0x154] ss:$8 sps:$4 sm:$0xff]  }
  0x81   : > { %v2023_v11 = vld [vmem:[#allocation5 + $0x150] ss:$8 sps:$4 sm:$0xff]   ;;  %v2024_v12 = vld [vmem:[#allocation5 + $0x164] ss:$8 sps:$4 sm:$0xff]   ;;  %v2026_v16 = vld [vmem:[#allocation5 + $0x160] ss:$8 sps:$4 sm:$0xff]  }
  0x82   : > { %v346_v13 = vld [vmem:[%s2613_s29 + $0x18] sm:$0xff]  ;;  %v353_v14 = vld [vmem:[%s2613_s29 + $0x50] sm:$0xff]  ;;  %v352_v55 = vld [vmem:[%s2613_s29 + $0x48] sm:$0xff]  ;;  %vm964_vm0 = vcmask 130048   ;;  %s1427_s22 = sld [smem:[#allocation2]]  ;;  %s1710_s23 = sshll.u32 %s2609_s18, 4 }
  0x83   : > { %1014 = vmatpush1.bf16.msra.mxu0 %v2011_v3  ;;  %v360_v15 = vpack.c.bf16 %v353_v14, %v346_v13  ;;  %v2027_v17 = vld [vmem:[#allocation5 + $0x174] ss:$8 sps:$4 sm:$0xff]   ;;  %v2060_v18 = vld [vmem:[#allocation5 + $0x4] ss:$8 sps:$4 sm:$0xff]   ;;  %v2029_v19 = vld [vmem:[#allocation5 + $0x170] ss:$8 sps:$4 sm:$0xff]  }
  0x84   : > { %1015 = vmatprep.subr.bf16.mxu0 %v2012_v4  ;;  %v2030_v20 = vld [vmem:[#allocation5 + $0x184] ss:$8 sps:$4 sm:$0xff]   ;;  %v2065_v21 = vld [vmem:[#allocation5] ss:$8 sps:$4 sm:$0xff]   ;;  %968 = vmatprep.subr.bf16.mxu1 %v2060_v18  ;;  %v2066_v22 = vld [vmem:[#allocation5 + $0x14] ss:$8 sps:$4 sm:$0xff]  }
  0x85   : > { %1043 = vmatprep.mubr.bf16.mxu0 %v360_v15  ;;  %969 = vmatpush1.bf16.msra.mxu1 %v2065_v21  ;;  %v2032_v23 = vld [vmem:[#allocation5 + $0x180] ss:$8 sps:$4 sm:$0xff]   ;;  %v2071_v24 = vld [vmem:[#allocation5 + $0x10] ss:$8 sps:$4 sm:$0xff]   ;;  %v2072_v25 = vld [vmem:[#allocation5 + $0x24] ss:$8 sps:$4 sm:$0xff]  }
  0x86   : > { %970 = vmatprep.subr.bf16.mxu1 %v2066_v22  ;;  %v2033_v26 = vld [vmem:[#allocation5 + $0x194] ss:$8 sps:$4 sm:$0xff]   ;;  %v2077_v27 = vld [vmem:[#allocation5 + $0x20] ss:$8 sps:$4 sm:$0xff]   ;;  %v2035_v29 = vld [vmem:[#allocation5 + $0x190] ss:$8 sps:$4 sm:$0xff]  }
  0x87   : > { %1016 = vmatpush1.bf16.msra.mxu0 %v2014_v5  ;;  %v2078_v28 = vld [vmem:[#allocation5 + $0x34] ss:$8 sps:$4 sm:$0xff]   ;;  %v2036_v30 = vld [vmem:[#allocation5 + $0x1a4] ss:$8 sps:$4 sm:$0xff]   ;;  %v2083_v31 = vld [vmem:[#allocation5 + $0x30] ss:$8 sps:$4 sm:$0xff]  }
  0x88   : > { %1017 = vmatprep.subr.bf16.mxu0 %v2015_v6  ;;  %v2084_v32 = vld [vmem:[#allocation5 + $0x44] ss:$8 sps:$4 sm:$0xff]   ;;  %v2038_v33 = vld [vmem:[#allocation5 + $0x1a0] ss:$8 sps:$4 sm:$0xff]   ;;  %v2039_v34 = vld [vmem:[#allocation5 + $0x1b4] ss:$8 sps:$4 sm:$0xff]  }
  0x89   : > { %971 = vmatpush1.bf16.msra.mxu1 %v2071_v24  ;;  %v2089_v35 = vld [vmem:[#allocation5 + $0x40] ss:$8 sps:$4 sm:$0xff]   ;;  %v2090_v36 = vld [vmem:[#allocation5 + $0x54] ss:$8 sps:$4 sm:$0xff]   ;;  %v2041_v37 = vld [vmem:[#allocation5 + $0x1b0] ss:$8 sps:$4 sm:$0xff]  }
  0x8a   : > { %972 = vmatprep.subr.bf16.mxu1 %v2072_v25  ;;  %v2042_v38 = vld [vmem:[#allocation5 + $0x1c4] ss:$8 sps:$4 sm:$0xff]   ;;  %v2095_v39 = vld [vmem:[#allocation5 + $0x50] ss:$8 sps:$4 sm:$0xff]   ;;  %v2044_v41 = vld [vmem:[#allocation5 + $0x1c0] ss:$8 sps:$4 sm:$0xff]  }
  0x8b   : > { %1018 = vmatpush1.bf16.msra.mxu0 %v2017_v7  ;;  %v2096_v40 = vld [vmem:[#allocation5 + $0x64] ss:$8 sps:$4 sm:$0xff]   ;;  %v2045_v42 = vld [vmem:[#allocation5 + $0x1d4] ss:$8 sps:$4 sm:$0xff]   ;;  %v2101_v43 = vld [vmem:[#allocation5 + $0x60] ss:$8 sps:$4 sm:$0xff]  }
  0x8c   : > { %1019 = vmatprep.subr.bf16.mxu0 %v2018_v8  ;;  %v2102_v44 = vld [vmem:[#allocation5 + $0x74] ss:$8 sps:$4 sm:$0xff]   ;;  %v2047_v45 = vld [vmem:[#allocation5 + $0x1d0] ss:$8 sps:$4 sm:$0xff]   ;;  %v2048_v46 = vld [vmem:[#allocation5 + $0x1e4] ss:$8 sps:$4 sm:$0xff]  }
  0x8d   : > { %973 = vmatpush1.bf16.msra.mxu1 %v2077_v27  ;;  %v2107_v47 = vld [vmem:[#allocation5 + $0x70] ss:$8 sps:$4 sm:$0xff]   ;;  %v2108_v48 = vld [vmem:[#allocation5 + $0x84] ss:$8 sps:$4 sm:$0xff]   ;;  %v2050_v49 = vld [vmem:[#allocation5 + $0x1e0] ss:$8 sps:$4 sm:$0xff]  }
  0x8e   : > { %974 = vmatprep.subr.bf16.mxu1 %v2078_v28  ;;  %v2051_v50 = vld [vmem:[#allocation5 + $0x1f4] ss:$8 sps:$4 sm:$0xff]   ;;  %v2113_v51 = vld [vmem:[#allocation5 + $0x80] ss:$8 sps:$4 sm:$0xff]   ;;  %v2053_v53 = vld [vmem:[#allocation5 + $0x1f0] ss:$8 sps:$4 sm:$0xff]  }
  0x8f   : > { %1020 = vmatpush1.bf16.msra.mxu0 %v2020_v9  ;;  %v2114_v52 = vld [vmem:[#allocation5 + $0x94] ss:$8 sps:$4 sm:$0xff]   ;;  %v2056_v56 = vld [vmem:[#allocation5 + $0x204] ss:$8 sps:$4 sm:$0xff]   ;;  %v2119_v57 = vld [vmem:[#allocation5 + $0x90] ss:$8 sps:$4 sm:$0xff]  }
  0x90   : > { %1021 = vmatprep.subr.bf16.mxu0 %v2021_v10  ;;  %v345_v54 = vld [vmem:[%s2613_s29 + $0x10] sm:$0xff]  ;;  %v348_v61 = vld [vmem:[%s2613_s29 + $0x28] sm:$0xff]  ;;  %v355_v62 = vld [vmem:[%s2613_s29 + $0x60] sm:$0xff]  ;;  %vm1443_vm1 = vcmask 7168   ;;  %s2647_s24 = scalar_lea.vmem [#allocation8], %s1710_s23   ;;  %p2716_p6 = scmp.ne.s32.totalorder %s2708_s13, 0 }
  0x91   : > { %975 = vmatpush1.bf16.msra.mxu1 %v2083_v31  ;;  %v2054_v58 = vld [vmem:[#allocation5 + $0x200] ss:$8 sps:$4 sm:$0xff]   ;;  %v359_v59 = vpack.c.bf16 %v352_v55, %v345_v54  ;;  %v2120_v60 = vld [vmem:[#allocation5 + $0xa4] ss:$8 sps:$4 sm:$0xff]   ;;  %v2059_v63 = vld [vmem:[#allocation5 + $0x214] ss:$8 sps:$4 sm:$0xff]   ;;  %v362_v0 = vpack.c.bf16 %v355_v62, %v348_v61 }
  0x92   : > { %976 = vmatprep.subr.bf16.mxu1 %v2084_v32  ;;  %v2125_v1 = vld [vmem:[#allocation5 + $0xa0] ss:$8 sps:$4 sm:$0xff]   ;;  %v2126_v2 = vld [vmem:[#allocation5 + $0xb4] ss:$8 sps:$4 sm:$0xff]   ;;  %v2057_v3 = vld [vmem:[#allocation5 + $0x210] ss:$8 sps:$4 sm:$0xff]  }
  0x93   : > { %1022 = vmatpush1.bf16.msra.mxu0 %v2023_v11  ;;  %v2064_v4 = vld [vmem:[#allocation5 + $0x224] ss:$8 sps:$4 sm:$0xff]   ;;  %v2131_v7 = vld [vmem:[#allocation5 + $0xb0] ss:$8 sps:$4 sm:$0xff]   ;;  %v2062_v10 = vld [vmem:[#allocation5 + $0x220] ss:$8 sps:$4 sm:$0xff]  }
  0x94   : > { %1023 = vmatprep.subr.bf16.mxu0 %v2024_v12  ;;  %v344_v5 = vld [vmem:[%s2613_s29 + $0x8] sm:$0xff]  ;;  %v351_v6 = vld [vmem:[%s2613_s29 + $0x40] sm:$0xff]  ;;  %v350_v27 = vld [vmem:[%s2613_s29 + $0x38] sm:$0xff]  ;;  %s1845_s25 = sshll.u32 (%p2716_p6), %s2467_s6, 1  ;;  %s1861_s19 = sshll.u32 (%p2716_p6), %s2467_s6, 4 }
  0x95   : > { %977 = vmatpush1.bf16.msra.mxu1 %v2089_v35  ;;  %v358_v8 = vpack.c.bf16 %v351_v6, %v344_v5  ;;  %v2132_v9 = vld [vmem:[#allocation5 + $0xc4] ss:$8 sps:$4 sm:$0xff]   ;;  %v2070_v11 = vld [vmem:[#allocation5 + $0x234] ss:$8 sps:$4 sm:$0xff]   ;;  %v2137_v12 = vld [vmem:[#allocation5 + $0xc0] ss:$8 sps:$4 sm:$0xff]   ;;  %s2658_s18 = scalar_lea.vmem (%p2716_p6), %s2702_s7, %s1861_s19  }
  0x96   : > { %978 = vmatprep.subr.bf16.mxu1 %v2090_v36  ;;  %v2138_v13 = vld [vmem:[#allocation5 + $0xd4] ss:$8 sps:$4 sm:$0xff]   ;;  %v2068_v14 = vld [vmem:[#allocation5 + $0x230] ss:$8 sps:$4 sm:$0xff]   ;;  %v2076_v15 = vld [vmem:[#allocation5 + $0x244] ss:$8 sps:$4 sm:$0xff]  }
  0x97   : > { %1024 = vmatpush1.bf16.msra.mxu0 %v2026_v16  ;;  %1000 = vmatprep.mubr.bf16.mxu1 %v358_v8  ;;  %v2143_v16 = vld [vmem:[#allocation5 + $0xd0] ss:$8 sps:$4 sm:$0xff]   ;;  %v2074_v18 = vld [vmem:[#allocation5 + $0x240] ss:$8 sps:$4 sm:$0xff]   ;;  %v2150_v21 = vld [vmem:[#allocation5 + $0xf4] ss:$8 sps:$4 sm:$0xff]  }
  0x98   : > { %1025 = vmatprep.subr.bf16.mxu0 %v2027_v17  ;;  %v2144_v17 = vld [vmem:[#allocation5 + $0xe4] ss:$8 sps:$4 sm:$0xff]   ;;  %v2080_v22 = vld [vmem:[#allocation5 + $0x250] ss:$8 sps:$4 sm:$0xff]   ;;  %v2086_v25 = vld [vmem:[#allocation5 + $0x260] ss:$8 sps:$4 sm:$0xff]  }
  0x99   : > { %979 = vmatpush1.bf16.msra.mxu1 %v2095_v39  ;;  %v2152_v24 = vld [vmem:[#allocation5 + $0xf0] ss:$8 sps:$4 sm:$0xff]   ;;  %v2094_v28 = vld [vmem:[#allocation5 + $0x274] ss:$8 sps:$4 sm:$0xff]   ;;  %v2158_v32 = vld [vmem:[#allocation7 + $0x14] ss:$8 sps:$4 sm:$0xff]  }
  0x9a   : > { %980 = vmatprep.subr.bf16.mxu1 %v2096_v40  ;;  %v2153_v31 = vld [vmem:[#allocation7] ss:$8 sps:$4 sm:$0xff]   ;;  %v2156_v35 = vld [vmem:[#allocation7 + $0x10] ss:$8 sps:$4 sm:$0xff]   ;;  %v2161_v36 = vld [vmem:[#allocation7 + $0x24] ss:$8 sps:$4 sm:$0xff]  }
  0x9b   : > { %1026 = vmatpush1.bf16.msra.mxu0 %v2029_v19  ;;  %v2082_v19 = vld [vmem:[#allocation5 + $0x254] ss:$8 sps:$4 sm:$0xff]   ;;  %v2159_v39 = vld [vmem:[#allocation7 + $0x20] ss:$8 sps:$4 sm:$0xff]   ;;  %v2164_v40 = vld [vmem:[#allocation7 + $0x34] ss:$8 sps:$4 sm:$0xff]  }
  0x9c   : > { %1027 = vmatprep.subr.bf16.mxu0 %v2030_v20  ;;  %v2149_v20 = vld [vmem:[#allocation5 + $0xe0] ss:$8 sps:$4 sm:$0xff]   ;;  %v2130_v54 = vld [vmem:[#allocation5 + $0x2d4] ss:$8 sps:$4 sm:$0xff]   ;;  %v2171_v55 = vld [vmem:[#allocation7 + $0x60] ss:$8 sps:$4 sm:$0xff]  }
  0x9d   : > { %981 = vmatpush1.bf16.msra.mxu1 %v2101_v43  ;;  %v2162_v43 = vld [vmem:[#allocation7 + $0x30] ss:$8 sps:$4 sm:$0xff]   ;;  %v2142_v62 = vld [vmem:[#allocation5 + $0x2f4] ss:$8 sps:$4 sm:$0xff]   ;;  %s1454_s11 = ssub.s32 (%p2716_p6), 3, %s1845_s25 }
  0x9e   : > { %982 = vmatprep.subr.bf16.mxu1 %v2102_v44  ;;  %v2167_v44 = vld [vmem:[#allocation7 + $0x44] ss:$8 sps:$4 sm:$0xff]   ;;  %v2134_v61 = vld [vmem:[#allocation5 + $0x2e0] ss:$8 sps:$4 sm:$0xff]   ;;  %p1455_p7 = scmp.lt.s32.totalorder (%p2716_p6), %s1454_s11, 2 }
  0x9f   : > { %1028 = vmatpush1.bf16.msra.mxu0 %v2032_v23  ;;  %v2088_v23 = vld [vmem:[#allocation5 + $0x264] ss:$8 sps:$4 sm:$0xff]   ;;  %v2180_v5 = vld [vmem:[#allocation7 + $0x90] ss:$8 sps:$4 sm:$0xff]  }
  0xa0   : > { %1029 = vmatprep.subr.bf16.mxu0 %v2033_v26  ;;  %v343_v26 = vld [vmem:[%s2613_s29] sm:$0xff] }
  0xa1   : > { %983 = vmatpush1.bf16.msra.mxu1 %v2107_v47  ;;  %v2165_v47 = vld [vmem:[#allocation7 + $0x40] ss:$8 sps:$4 sm:$0xff]   ;;  %v2146_v8 = vld [vmem:[#allocation5 + $0x300] ss:$8 sps:$4 sm:$0xff]  }
  0xa2   : > { %984 = vmatprep.subr.bf16.mxu1 %v2108_v48  ;;  %v2170_v48 = vld [vmem:[#allocation7 + $0x54] ss:$8 sps:$4 sm:$0xff]  }
  0xa3   : > { %1030 = vmatpush1.bf16.msra.mxu0 %v2035_v29  ;;  %v2155_v29 = vld [vmem:[#allocation7 + $0x4] ss:$8 sps:$4 sm:$0xff]  }
  0xa4   : > { %1031 = vmatprep.subr.bf16.mxu0 %v2036_v30  ;;  %v357_v30 = vpack.c.bf16 %v350_v27, %v343_v26 }
  0xa5   : > { %985 = vmatpush1.bf16.msra.mxu1 %v2113_v51  ;;  %v2168_v51 = vld [vmem:[#allocation7 + $0x50] ss:$8 sps:$4 sm:$0xff]  }
  0xa6   : > { %986 = vmatprep.subr.bf16.mxu1 %v2114_v52  ;;  %v2173_v52 = vld [vmem:[#allocation7 + $0x64] ss:$8 sps:$4 sm:$0xff]  }
  0xa7   : > { %1032 = vmatpush1.bf16.msra.mxu0 %v2038_v33  ;;  %v2092_v33 = vld [vmem:[#allocation5 + $0x270] ss:$8 sps:$4 sm:$0xff]  }
  0xa8   : > { %1033 = vmatprep.subr.bf16.mxu0 %v2039_v34  ;;  %v2100_v34 = vld [vmem:[#allocation5 + $0x284] ss:$8 sps:$4 sm:$0xff]  }
  0xa9   : > { %987 = vmatpush1.bf16.msra.mxu1 %v2119_v57  ;;  %v2128_v57 = vld [vmem:[#allocation5 + $0x2d0] ss:$8 sps:$4 sm:$0xff]  }
  0xaa   : > { %988 = vmatprep.subr.bf16.mxu1 %v2120_v60  ;;  %v2179_v60 = vld [vmem:[#allocation7 + $0x84] ss:$8 sps:$4 sm:$0xff]  }
  0xab   : > { %1034 = vmatpush1.bf16.msra.mxu0 %v2041_v37  ;;  %v2098_v37 = vld [vmem:[#allocation5 + $0x280] ss:$8 sps:$4 sm:$0xff]  }
  0xac   : > { %1035 = vmatprep.subr.bf16.mxu0 %v2042_v38  ;;  %v2106_v38 = vld [vmem:[#allocation5 + $0x294] ss:$8 sps:$4 sm:$0xff]  }
  0xad   : > { %989 = vmatpush1.bf16.msra.mxu1 %v2125_v1  ;;  %v2140_v1 = vld [vmem:[#allocation5 + $0x2f0] ss:$8 sps:$4 sm:$0xff]  }
  0xae   : > { %990 = vmatprep.subr.bf16.mxu1 %v2126_v2  ;;  %v347_v2 = vld [vmem:[%s2613_s29 + $0x20] sm:$0xff] }
  0xaf   : > { %1036 = vmatpush1.bf16.msra.mxu0 %v2044_v41  ;;  %v2104_v41 = vld [vmem:[#allocation5 + $0x290] ss:$8 sps:$4 sm:$0xff]  }
  0xb0   : > { %1037 = vmatprep.subr.bf16.mxu0 %v2045_v42  ;;  %v2112_v42 = vld [vmem:[#allocation5 + $0x2a4] ss:$8 sps:$4 sm:$0xff]  }
  0xb1   : > { %991 = vmatpush1.bf16.msra.mxu1 %v2131_v7  ;;  %v2185_v7 = vld [vmem:[#allocation7 + $0xa4] ss:$8 sps:$4 sm:$0xff]  }
  0xb2   : > { %992 = vmatprep.subr.bf16.mxu1 %v2132_v9  ;;  %v2183_v9 = vld [vmem:[#allocation7 + $0xa0] ss:$8 sps:$4 sm:$0xff]  }
  0xb3   : > { %1038 = vmatpush1.bf16.msra.mxu0 %v2047_v45  ;;  %v2110_v45 = vld [vmem:[#allocation5 + $0x2a0] ss:$8 sps:$4 sm:$0xff]  }
  0xb4   : > { %1039 = vmatprep.subr.bf16.mxu0 %v2048_v46  ;;  %v2118_v46 = vld [vmem:[#allocation5 + $0x2b4] ss:$8 sps:$4 sm:$0xff]  }
  0xb5   : > { %993 = vmatpush1.bf16.msra.mxu1 %v2137_v12  ;;  %v2186_v12 = vld [vmem:[#allocation7 + $0xb0] ss:$8 sps:$4 sm:$0xff]  }
  0xb6   : > { %994 = vmatprep.subr.bf16.mxu1 %v2138_v13  ;;  %v349_v13 = vld [vmem:[%s2613_s29 + $0x30] sm:$0xff] }
  0xb7   : > { %1040 = vmatpush1.bf16.msra.mxu0 %v2050_v49  ;;  %v2116_v49 = vld [vmem:[#allocation5 + $0x2b0] ss:$8 sps:$4 sm:$0xff]  }
  0xb8   : > { %1041 = vmatprep.subr.bf16.mxu0 %v2051_v50  ;;  %v2124_v50 = vld [vmem:[#allocation5 + $0x2c4] ss:$8 sps:$4 sm:$0xff]  }
  0xb9   : > { %995 = vmatpush1.bf16.msra.mxu1 %v2143_v16  ;;  %v2189_v16 = vld [vmem:[#allocation7 + $0xc0] ss:$8 sps:$4 sm:$0xff]  }
  0xba   : > { %996 = vmatprep.subr.bf16.mxu1 %v2144_v17  ;;  %v2191_v17 = vld [vmem:[#allocation7 + $0xc4] ss:$8 sps:$4 sm:$0xff]  }
  0xbb   : > { %1042 = vmatpush1.bf16.msra.mxu0 %v2053_v53  ;;  %v2122_v53 = vld [vmem:[#allocation5 + $0x2c0] ss:$8 sps:$4 sm:$0xff]  }
  0xbc   : > { %1054 = vmatprep.subr.bf16.mxu0 %v2056_v56  ;;  %v2176_v56 = vld [vmem:[#allocation7 + $0x74] ss:$8 sps:$4 sm:$0xff]  }
  0xbd   : > { %997 = vmatpush1.bf16.msra.mxu1 %v2149_v20  ;;  %v2197_v20 = vld [vmem:[#allocation7 + $0xe4] ss:$8 sps:$4 sm:$0xff]  }
  0xbe   : > { %1044 = vmatmul.mubr.bf16.vlgmr.msra.gmra.mrb[0].mxu0 %v359_v59  ;;  %998 = vmatprep.subr.bf16.mxu1 %v2150_v21  ;;  %v2174_v59 = vld [vmem:[#allocation7 + $0x70] ss:$8 sps:$4 sm:$0xff]   ;;  %v2195_v21 = vld [vmem:[#allocation7 + $0xe0] ss:$8 sps:$4 sm:$0xff]  }
  0xbf   : > { %1055 = vmatpush1.bf16.msra.mxu0 %v2054_v58  ;;  %1086 = vmatprep.mubr.bf16.mxu0 %v362_v0  ;;  %v2136_v58 = vld [vmem:[#allocation5 + $0x2e4] ss:$8 sps:$4 sm:$0xff]  }
  0xc0   : > { %1056 = vmatprep.subr.bf16.mxu0 %v2059_v63  ;;  %v2177_v63 = vld [vmem:[#allocation7 + $0x80] ss:$8 sps:$4 sm:$0xff]   ;;  %v2182_v0 = vld [vmem:[#allocation7 + $0x94] ss:$8 sps:$4 sm:$0xff]  }
  0xc1   : > { %999 = vmatpush1.bf16.msra.mxu1 %v2152_v24 }
  0xc2   : > { %1354 = vmatprep.subr.bf16.mxu1 %v2155_v29 }
  0xc3   : > { %1057 = vmatpush1.bf16.msra.mxu0 %v2057_v3  ;;  %v354_v3 = vld [vmem:[%s2613_s29 + $0x58] sm:$0xff] }
  0xc4   : > { %1058 = vmatprep.subr.bf16.mxu0 %v2064_v4  ;;  %1001 = vmatmul.mubr.bf16.vlgmr.msra.gmra.mrb[0].mxu1 %v357_v30  ;;  %v2148_v4 = vld [vmem:[#allocation5 + $0x304] ss:$8 sps:$4 sm:$0xff]   ;;  %v361_v6 = vpack.c.bf16 %v354_v3, %v347_v2 }
  0xc5   : > { %1355 = vmatpush1.bf16.msra.mxu1 %v2153_v31  ;;  %v462_v31 = vld [vmem:[%s2697_s2] sm:$0x3] }
  0xc6   : > { %1356 = vmatprep.subr.bf16.mxu1 %v2158_v32 }
  0xc7   : > { %1059 = vmatpush1.bf16.msra.mxu0 %v2062_v10  ;;  %v2188_v10 = vld [vmem:[#allocation7 + $0xb4] ss:$8 sps:$4 sm:$0xff]  }
  0xc8   : > { %1060 = vmatprep.subr.bf16.mxu0 %v2070_v11  ;;  %v2404_v11 = vmov 0  }
  0xc9   : > { %1357 = vmatpush1.bf16.msra.mxu1 %v2156_v35 }
  0xca   : > { %1358 = vmatprep.subr.bf16.mxu1 %v2161_v36 }
  0xcb   : > { %1061 = vmatpush1.bf16.msra.mxu0 %v2068_v14  ;;  %v356_v14 = vld [vmem:[%s2613_s29 + $0x68] sm:$0xff] }
  0xcc   : > { %1062 = vmatprep.subr.bf16.mxu0 %v2076_v15  ;;  %v363_v15 = vpack.c.bf16 %v356_v14, %v349_v13 }
  0xcd   : > { %1359 = vmatpush1.bf16.msra.mxu1 %v2159_v39 }
  0xce   : > { %1360 = vmatprep.subr.bf16.mxu1 %v2164_v40 }
  0xcf   : > { %1063 = vmatpush1.bf16.msra.mxu0 %v2074_v18  ;;  %v2194_v18 = vld [vmem:[#allocation7 + $0xd4] ss:$8 sps:$4 sm:$0xff]  }
  0xd0   : > { %1064 = vmatprep.subr.bf16.mxu0 %v2082_v19  ;;  %v2192_v19 = vld [vmem:[#allocation7 + $0xd0] ss:$8 sps:$4 sm:$0xff]  }
  0xd1   : > { %1361 = vmatpush1.bf16.msra.mxu1 %v2162_v43 }
  0xd2   : > { %1362 = vmatprep.subr.bf16.mxu1 %v2167_v44 }
  0xd3   : > { %1065 = vmatpush1.bf16.msra.mxu0 %v2080_v22  ;;  %v2200_v22 = vld [vmem:[#allocation7 + $0xf4] ss:$8 sps:$4 sm:$0xff]  }
  0xd4   : > { %1066 = vmatprep.subr.bf16.mxu0 %v2088_v23  ;;  %v2198_v23 = vld [vmem:[#allocation7 + $0xf0] ss:$8 sps:$4 sm:$0xff]  }
  0xd5   : > { %1363 = vmatpush1.bf16.msra.mxu1 %v2165_v47 }
  0xd6   : > { %1364 = vmatprep.subr.bf16.mxu1 %v2170_v48 }
  0xd7   : > { %1067 = vmatpush1.bf16.msra.mxu0 %v2086_v25 }
  0xd8   : > { %1068 = vmatprep.subr.bf16.mxu0 %v2094_v28  ;;  %v464_v28 = vlaneseq }
  0xd9   : > { %1365 = vmatpush1.bf16.msra.mxu1 %v2168_v51 }
  0xda   : > { %1366 = vmatprep.subr.bf16.mxu1 %v2173_v52  ;;  %v465_v29 = vshrl.u32 %v464_v28, 7 }
  0xdb   : > { %1069 = vmatpush1.bf16.msra.mxu0 %v2092_v33 }
  0xdc   : > { %1070 = vmatprep.subr.bf16.mxu0 %v2100_v34  ;;  %v466_v30 = vsub.s32 0, %v465_v29  ;;  %v470_v32 = vsub.s32 1, %v465_v29 }
  0xdd   : > { %1367 = vmatpush1.bf16.msra.mxu1 %v2171_v55 }
  0xde   : > { %1368 = vmatprep.subr.bf16.mxu1 %v2176_v56  ;;  %v467_v33 = vrot.slane %v462_v31, %v466_v30  ;;  %v471_v34 = vrot.slane %v462_v31, %v470_v32 }
  0xdf   : > { %1071 = vmatpush1.bf16.msra.mxu0 %v2098_v37 }
  0xe0   : > { %1072 = vmatprep.subr.bf16.mxu0 %v2106_v38 }
  0xe1   : > { %1369 = vmatpush1.bf16.msra.mxu1 %v2174_v59 }
  0xe2   : > { %1370 = vmatprep.subr.bf16.mxu1 %v2179_v60 }
  0xe3   : > { %1073 = vmatpush1.bf16.msra.mxu0 %v2104_v41 }
  0xe4   : > { %1074 = vmatprep.subr.bf16.mxu0 %v2112_v42 }
  0xe5   : > { %1371 = vmatpush1.bf16.msra.mxu1 %v2177_v63 }
  0xe6   : > { %1372 = vmatprep.subr.bf16.mxu1 %v2182_v0 }
  0xe7   : > { %1075 = vmatpush1.bf16.msra.mxu0 %v2110_v45 }
  0xe8   : > { %1076 = vmatprep.subr.bf16.mxu0 %v2118_v46 }
  0xe9   : > { %1373 = vmatpush1.bf16.msra.mxu1 %v2180_v5 }
  0xea   : > { %1374 = vmatprep.subr.bf16.mxu1 %v2185_v7 }
  0xeb   : > { %1077 = vmatpush1.bf16.msra.mxu0 %v2116_v49 }
  0xec   : > { %1078 = vmatprep.subr.bf16.mxu0 %v2124_v50 }
  0xed   : > { %1375 = vmatpush1.bf16.msra.mxu1 %v2183_v9 }
  0xee   : > { %1376 = vmatprep.subr.bf16.mxu1 %v2188_v10 }
  0xef   : > { %1079 = vmatpush1.bf16.msra.mxu0 %v2122_v53 }
  0xf0   : > { %1080 = vmatprep.subr.bf16.mxu0 %v2130_v54 }
  0xf1   : > { %1377 = vmatpush1.bf16.msra.mxu1 %v2186_v12 }
  0xf2   : > { %1378 = vmatprep.subr.bf16.mxu1 %v2191_v17 }
  0xf3   : > { %1081 = vmatpush1.bf16.msra.mxu0 %v2128_v57  ;;  %v1182_v57 = vld [vmem:[%s2699_s4] sm:$0x3] }
  0xf4   : > { %1082 = vmatprep.subr.bf16.mxu0 %v2136_v58  ;;  %v1187_v58 = vrot.slane %v1182_v57, %v466_v30  ;;  %v1191_v59 = vrot.slane %v1182_v57, %v470_v32 }
  0xf5   : > { %1379 = vmatpush1.bf16.msra.mxu1 %v2189_v16 }
  0xf6   : > { %1380 = vmatprep.subr.bf16.mxu1 %v2194_v18 }
  0xf7   : > { %1083 = vmatpush1.bf16.msra.mxu0 %v2134_v61  ;;  %v1405_v61 = vld [vmem:[%s2700_s5] sm:$0x3] }
  0xf8   : > { %1084 = vmatprep.subr.bf16.mxu0 %v2142_v62  ;;  %v1410_v5 = vrot.slane %v1405_v61, %v466_v30 }
  0xf9   : > { %1381 = vmatpush1.bf16.msra.mxu1 %v2192_v19 }
  0xfa   : > { %1382 = vmatprep.subr.bf16.mxu1 %v2197_v20 }
  0xfb   : > { %1085 = vmatpush1.bf16.msra.mxu0 %v2140_v1 }
  0xfc   : > { %1097 = vmatprep.subr.bf16.mxu0 %v2148_v4 }
  0xfd   : > { %1383 = vmatpush1.bf16.msra.mxu1 %v2195_v21  ;;  %v1428_v21 = vstv %s1427_s22 }
  0xfe   : > { %1087 = vmatmul.mubr.bf16.vlgmr.msra.gmra.mrb[0].mxu0 %v361_v6  ;;  %1384 = vmatprep.subr.bf16.mxu1 %v2200_v22 }
  0xff   : > { %1098 = vmatpush1.bf16.msra.mxu0 %v2146_v8  ;;  %1129 = vmatprep.mubr.bf16.mxu0 %v2404_v11  ;;  %v1414_v8 = vrot.slane %v1405_v61, %v470_v32 }
 0x101   : > { %1385 = vmatpush1.bf16.msra.mxu1 %v2198_v23 }
 0x10a   : > { %1809 = vmatmul.mubr.msk.bf16.vlgmr.msra.gmra.mrb[0].mxu0 %vm964_vm0, %v363_v15 }
 0x197   : > { %v1002_v24 = vpop.f32.mrb[0].mxu1 }
 0x198   : > { %v1004_v25 = vpop.f32.mrb[1].mxu1  ;;  %v1003_v35 = vadd.f32 %v1002_v24, %v467_v33 }
 0x199   : > { %v1006_v26 = vpop.f32.mrb[2].mxu1  ;;  %v1005_v36 = vadd.f32 %v1004_v25, %v471_v34 }
 0x19a   : > { %v1008_v27 = vpop.f32.mrb[3].mxu1  ;;  %v1007_v38 = vadd.f32 %v1006_v26, %v467_v33 }
 0x19b   : > { %v1009_v41 = vadd.f32 %v1008_v27, %v471_v34 }
 0x1dd   : > { %v1131_v37 = vpop.f32.mrb[0].mxu0 }
 0x1de   : > { %v1865_v39 = vadd.f32 %v1131_v37, %v1003_v35  ;;  %v1133_v40 = vpop.f32.mrb[1].mxu0 }
 0x1df   : > { %v1867_v42 = vadd.f32 %v1133_v40, %v1005_v36  ;;  %v1135_v43 = vpop.f32.mrb[2].mxu0 }
 0x1e0   : > { %v1140_v44 = vmul.f32 0.2, %v1865_v39  ;;  %v1869_v45 = vadd.f32 %v1135_v43, %v1007_v38  ;;  %v1137_v46 = vpop.f32.mrb[3].mxu0 }
 0x1e1   : > { %v1141_v47 = vmul.f32 0.2, %v1867_v42  ;;  %v1871_v48 = vadd.f32 %v1137_v46, %v1009_v41 }
 0x1e2   : > { %v1142_v49 = vmul.f32 0.2, %v1869_v45  ;;  %v1144_v51 = vmax.f32 %v1865_v39, %v1140_v44 }
 0x1e3   : > { %v1143_v50 = vmul.f32 0.2, %v1871_v48  ;;  %v1145_v53 = vmax.f32 %v1867_v42, %v1141_v47 }
 0x1e4   : > { %v1146_v52 = vmax.f32 %v1869_v45, %v1142_v49 }
 0x1e5   : > { %v1147_v54 = vmax.f32 %v1871_v48, %v1143_v50 }
 0x1e6   : > { %v1148_v55 = vpack.c.bf16 %v1146_v52, %v1144_v51 }
 0x1e7   : > { %v1149_v56 = vpack.c.bf16 %v1147_v54, %v1145_v53 }
 0x1e9   : > { %1386 = vmatprep.mubr.bf16.mxu1 %v1149_v56 }
 0x1ea   : > { %1387 = vmatmul.mubr.bf16.vlgmr.msra.gmra.mrb[4].mxu1 %v1148_v55 }
 0x2bd   : > { %v1388_v60 = vpop.f32.mrb[4].mxu1 }
 0x2be   : > { %v1389_v62 = vadd.f32 %v1388_v60, %v1187_v58  ;;  %v1390_v63 = vpop.f32.mrb[5].mxu1 }
 0x2bf   : > { %v1391_v0 = vadd.f32 %v1390_v63, %v1191_v59  ;;  %v1392_v1 = vpop.f32.mrb[6].mxu1 }
 0x2c0   : > { %v1397_v2 = vmul.f32 0.2, %v1389_v62  ;;  %v1393_v3 = vadd.f32 %v1392_v1, %v1187_v58  ;;  %v1394_v4 = vpop.f32.mrb[7].mxu1 }
 0x2c1   : > { %v1398_v6 = vmul.f32 0.2, %v1391_v0  ;;  %v1395_v7 = vadd.f32 %v1394_v4, %v1191_v59 }
 0x2c2   : > { %v1401_v9 = vmax.f32 %v1389_v62, %v1397_v2  ;;  %v1399_v10 = vmul.f32 0.2, %v1393_v3 }
 0x2c3   : > { %v1402_v11 = vmax.f32 %v1391_v0, %v1398_v6  ;;  %v1400_v12 = vmul.f32 0.2, %v1395_v7 }
 0x2c4   : > { %v1403_v13 = vmax.f32 %v1393_v3, %v1399_v10  ;;  %v1417_v14 = vmul.f32 %v1410_v5, %v1401_v9 }
 0x2c5   : > { %v1404_v15 = vmax.f32 %v1395_v7, %v1400_v12  ;;  %v1418_v16 = vmul.f32 %v1414_v8, %v1402_v11 }
 0x2c6   : > { %v1419_v17 = vmul.f32 %v1410_v5, %v1403_v13 }
 0x2c7   : > { %v1421_v18 = vadd.f32 %v1418_v16, %v1417_v14  ;;  %v1420_v19 = vmul.f32 %v1414_v8, %v1404_v15 }
 0x2c9   : > { %1422 = vadd.xlane.f32.xlu0 %v1421_v18  ;;  %v1424_v20 = vadd.f32 %v1420_v19, %v1419_v17 }
 0x2cd   : > { %1425 = vadd.xlane.f32.xlu0 %v1424_v20 }
 0x356   : > { %v1423_v22 = vpop.xlane.xlu0 %1422 }
 0x357   : > { %v1429_v23 = vadd.f32 %v1428_v21, %v1423_v22 }
 0x359   : > { %v1842_v24 = vmul.f32 -1.442695, %v1429_v23 }
 0x35a   : > { %v1426_v25 = vpop.xlane.xlu0 %1425 }
 0x35b   : > { %2201 = vpow2.f32 %v1842_v24  ;;  %v1430_v26 = vadd.f32 %v1428_v21, %v1426_v25 }
 0x35d   : > { %v1843_v27 = vmul.f32 -1.442695, %v1430_v26 }
 0x35f   : > { %2203 = vpow2.f32 %v1843_v27 }
 0x365   : > { %v2202_v28 = vpop.eup %2201 }
 0x366   : > { %v1437_v29 = vadd.f32 1.0, %v2202_v28 }
 0x368   : > { %2205 = vrcp.f32 %v1437_v29 }
 0x369   : > { %v2204_v30 = vpop.eup %2203 }
 0x36a   : > { %v1438_v31 = vadd.f32 1.0, %v2204_v30 }
 0x36c   : > { %2207 = vrcp.f32 %v1438_v31 }
 0x371   : > { %1452 = sbr.rel (!%p2716_p6) target bundleno = 937 (0x3a9), region = 64 }
 0x372   : > { %v2206_v32 = vpop.eup %2205 }
 0x373   : > { %1444 = vst.msk [vmem:[%s2647_s24] sm:$0xff] %vm1443_vm1, %v2206_v32 }
 0x376   : > { %v2208_v33 = vpop.eup %2207 }
 0x377   : > { %1445 = vst.msk [vmem:[%s2647_s24 + $0x8] sm:$0xff] %vm1443_vm1, %v2208_v33 }
 0x378   : > { %s2724_s11 = smov (!%p1455_p7, %s1454_s11), 2 }
 0x379   : > { %s1846_s20 = sshll.u32 %s2724_s11, 7 }
 0x37a   : > { %p1849_p9 = scmp.eq.s32.totalorder %s1846_s20, 0 }
 0x37b   : > { %s2664_s13 = sshrl.u32 (!%p1849_p9), %s2724_s11, 1 }
 0x37c   : > { %1463 = sbr.rel (%p1849_p9) target bundleno = 937 (0x3a9), region = 68  ;;  %p1850_p12 = scmp.le.s32.totalorder (!%p1849_p9), %s2664_s13, 0 }
 0x383   : > { %1630 = sbr.rel (%p1850_p12) target bundleno = 916 (0x394), region = 150  ;;  %s2365_s6 = smov (!%p1850_p12), %s2658_s18  }
 0x384   : > { %s2369_s21 = smov (!%p1850_p12), %s2647_s24   ;;  %s2373_s29 = smov (!%p1850_p12), 0  }
 0x385   : > { %s2377_s12 = smov (!%p1850_p12), 0  }
 0x38a LB: >> { %v1527_v34 = vld [vmem:[%s2371_s21] sm:$0xff]  ;;  %v1529_v35 = vld [vmem:[%s2371_s21 + $0x8] sm:$0xff]  ;;  %s1531_s14 = sadd.s32 1, %s2375_s29  ;;  %s1521_s12 = sadd.s32 1, %s2379_s12   ;;  %s2379_s12 = sphi %s2377_s12, %s1521_s12   ;;  %s2375_s29 = sphi %s2373_s29, %s2374_s29   ;;  %s2371_s21 = sphi %s2369_s21, %s1536_s21   ;;  %s2367_s6 = sphi %s2365_s6, %s1537_s6  }
 0x38b   : >> { %1528 = vst [vmem:[%s2367_s6] sm:$0xff] %v1527_v34  ;;  %1530 = vst [vmem:[%s2367_s6 + $0x8] sm:$0xff] %v1529_v35  ;;  %p1532_p0 = scmp.ge.s32.totalorder %s1531_s14, %s2664_s13  ;;  %p1520_p4 = scmp.ge.s32.totalorder %s1521_s12, %s2664_s13 }
 0x38d   : >> { %s2726_s14 = smov (%p1532_p0, %s1531_s14), 0  ;;  %1523 = sbr.rel (!%p1520_p4) target bundleno = 906 (0x38a), region = 156 }
 0x38e   : >> { %s1851_s17 = sshll.u32 %s2726_s14, 4  ;;  %s2374_s29 = smov %s2726_s14  }
 0x38f   : >> { %s1536_s21 = scalar_lea.vmem %s2647_s24, %s1851_s17 [#allocation8]   ;;  %s1537_s6 = scalar_lea.vmem %s2658_s18, %s1851_s17  }
 0x394 PF: > { %s2674_s26 = sand.u32 1, %s2724_s11   ;;  %s1862_s9 = sshll.u32 %s2664_s13, 4 }
 0x395   : > { %s1542_s16 = scalar_lea.vmem %s2647_s24, %s1862_s9 [#allocation8]   ;;  %s1544_s22 = scalar_lea.vmem %s2658_s18, %s1862_s9  }
 0x396   : > { %p1856_p1 = scmp.le.s32.totalorder %s2674_s26, 0 }
 0x397   : > { %s2381_s23 = smov (!%p1856_p1), %s1544_s22   ;;  %s2385_s25 = smov (!%p1856_p1), %s1542_s16  }
 0x398   : > { %1644 = sbr.rel (%p1856_p1) target bundleno = 937 (0x3a9), region = 161  ;;  %s2389_s19 = smov (!%p1856_p1), 0  }
 0x399   : > { %s2393_s15 = smov (!%p1856_p1), 0  }
 0x39f LB: >> { %v1554_v36 = vld [vmem:[%s2387_s25] sm:$0xff]  ;;  %s1556_s11 = sadd.s32 1, %s2391_s19  ;;  %s1548_s15 = sadd.s32 1, %s2395_s15   ;;  %s2395_s15 = sphi %s2393_s15, %s1548_s15   ;;  %s2391_s19 = sphi %s2389_s19, %s2390_s19   ;;  %s2387_s25 = sphi %s2385_s25, %s1561_s25   ;;  %s2383_s23 = sphi %s2381_s23, %s1562_s23  }
 0x3a0   : >> { %1555 = vst [vmem:[%s2383_s23] sm:$0xff] %v1554_v36  ;;  %p1557_p5 = scmp.ge.s32.totalorder %s1556_s11, %s2674_s26  ;;  %p1547_p8 = scmp.ge.s32.totalorder %s1548_s15, %s2674_s26 }
 0x3a2   : >> { %s2728_s11 = smov (%p1557_p5, %s1556_s11), 0  ;;  %1550 = sbr.rel (!%p1547_p8) target bundleno = 927 (0x39f), region = 167 }
 0x3a3   : >> { %s1857_s24 = sshll.u32 %s2728_s11, 3  ;;  %s2390_s19 = smov %s2728_s11  }
 0x3a4   : >> { %s1561_s25 = scalar_lea.vmem %s1542_s16, %s1857_s24 [#allocation8]   ;;  %s1562_s23 = scalar_lea.vmem %s1544_s22, %s1857_s24  }
 0x3a9 PF: > { %p19_p11 = scmp.ge.s32.totalorder %s2470_s30, 4   ;;  %s2717_s26 = smov %s2355_s27 }
 0x3aa   : > { %s2718_s27 = smov %s2359_s28  ;;  %s2719_s28 = smov %s2480_s10 }
 0x3ab   : > { %s2720_s29 = smov %s2470_s30  ;;  %21 = sbr.rel (!%p19_p11) target bundleno = 6 (0x6), region = 178 }
 0x3b2   :  { %1578 = vsyncpa [#allocation4], 1 }
 0x3b3   :  { %1580 = vsyncpa [#allocation4 + $0x1], 1 }
 0x3b4   :  { %1581 = vsyncpa [#allocation6], 1 }

</bundles_post_ra>
